<compile_context>
chip_gen: v5e
topology: v5e:2x2
jax: 0.10.0
libtpu: 0.0.40
codegen_flags: <defaults>
</compile_context>

<pallas_src>
import jax
import jax.numpy as jnp
from jax.experimental import pallas as pl
from jax.experimental.pallas import tpu as pltpu

IN_FEATURES = 2
OUT_FEATURES = 2


def linear_kernel(w_ref, b_ref, x_ref, o_ref):
    # w_ref: SMEM (2, 2) in PyTorch layout W[out, in]
    # b_ref: SMEM (2,)
    # x_ref, o_ref: VMEM (batch, 2) full-array blocks
    x0 = x_ref[:, 0:1]  # (batch, 1)
    x1 = x_ref[:, 1:2]  # (batch, 1)
    # y[:, j] = x[:, 0] * W[j, 0] + x[:, 1] * W[j, 1] + b[j]   (VPU FMAs only)
    o_ref[:, 0:1] = x0 * w_ref[0, 0] + x1 * w_ref[0, 1] + b_ref[0]
    o_ref[:, 1:2] = x0 * w_ref[1, 0] + x1 * w_ref[1, 1] + b_ref[1]


def linear_pallas(x, weight, bias):
    """y = x @ weight.T + bias  (weight: (out, in), bias: (out,)) — PyTorch Linear semantics."""
    batch, _ = x.shape
    out_f = weight.shape[0]
    return pl.pallas_call(
        linear_kernel,
        out_shape=jax.ShapeDtypeStruct((batch, out_f), x.dtype),
        in_specs=[
            pl.BlockSpec(memory_space=pltpu.MemorySpace.SMEM),  # weight scalars
            pl.BlockSpec(memory_space=pltpu.MemorySpace.SMEM),  # bias scalars
            pl.BlockSpec(memory_space=pltpu.MemorySpace.VMEM),  # x, full array
        ],
        out_specs=pl.BlockSpec(memory_space=pltpu.MemorySpace.VMEM),
    )(weight, bias, x)


if __name__ == "__main__":
    key = jax.random.PRNGKey(0)
    kx, kw, kb = jax.random.split(key, 3)

    # Deterministic "parameters" for nn.Linear(2, 2): weight (2, 2), bias (2,)
    weight = jax.random.normal(kw, (OUT_FEATURES, IN_FEATURES), jnp.float32) * 0.5
    bias = jax.random.normal(kb, (OUT_FEATURES,), jnp.float32) * 0.1

    # Small input batch consistent with the forward: x of shape (batch, 2)
    x = jax.random.normal(kx, (8, IN_FEATURES), jnp.float32)

    y = linear_pallas(x, weight, bias)
    jax.block_until_ready(y)

    # Cross-check against plain JAX reference for sanity.
    y_ref = x @ weight.T + bias
    assert y.shape == (8, OUT_FEATURES)
    assert jnp.allclose(y, y_ref, atol=1e-5, rtol=1e-5)

    print("KERNEL_OK")
</pallas_src>

<mosaic_0001>
module attributes {stable_mosaic.version = 11 : i64} {
  func.func @linear_kernel(%arg0: memref<2x2xf32, #tpu.memory_space<smem>>, %arg1: memref<2xf32, #tpu.memory_space<smem>>, %arg2: memref<8x2xf32, #tpu.memory_space<vmem>>, %arg3: memref<8x2xf32, #tpu.memory_space<vmem>>) attributes {dimension_semantics = [], scalar_prefetch = 0 : i64, scratch_operands = 0 : i64, tpu.core_type = #tpu.core_type<tc>} {
    %c0 = arith.constant 0 : index
    %c0_0 = arith.constant 0 : index
    %0 = vector.load %arg2[%c0, %c0_0] : memref<8x2xf32, #tpu.memory_space<vmem>>, vector<8x1xf32>
    %c0_1 = arith.constant 0 : index
    %c1 = arith.constant 1 : index
    %1 = vector.load %arg2[%c0_1, %c1] : memref<8x2xf32, #tpu.memory_space<vmem>>, vector<8x1xf32>
    %c0_2 = arith.constant 0 : index
    %c0_3 = arith.constant 0 : index
    %2 = memref.load %arg0[%c0_2, %c0_3] : memref<2x2xf32, #tpu.memory_space<smem>>
    %3 = vector.broadcast %2 : f32 to vector<8x1xf32>
    %4 = arith.mulf %0, %3 : vector<8x1xf32>
    %c0_4 = arith.constant 0 : index
    %c1_5 = arith.constant 1 : index
    %5 = memref.load %arg0[%c0_4, %c1_5] : memref<2x2xf32, #tpu.memory_space<smem>>
    %6 = vector.broadcast %5 : f32 to vector<8x1xf32>
    %7 = arith.mulf %1, %6 : vector<8x1xf32>
    %8 = arith.addf %4, %7 : vector<8x1xf32>
    %c0_6 = arith.constant 0 : index
    %9 = memref.load %arg1[%c0_6] : memref<2xf32, #tpu.memory_space<smem>>
    %10 = vector.broadcast %9 : f32 to vector<8x1xf32>
    %11 = arith.addf %8, %10 : vector<8x1xf32>
    %c0_7 = arith.constant 0 : index
    %c0_8 = arith.constant 0 : index
    %12 = vector.load %arg3[%c0_7, %c0_8] : memref<8x2xf32, #tpu.memory_space<vmem>>, vector<8x1xf32>
    tpu.vector_store %arg3[%c0_7, %c0_8], %11 {strides = array<i32>} : memref<8x2xf32, #tpu.memory_space<vmem>>, vector<8x1xf32>,
    %c1_9 = arith.constant 1 : index
    %c0_10 = arith.constant 0 : index
    %13 = memref.load %arg0[%c1_9, %c0_10] : memref<2x2xf32, #tpu.memory_space<smem>>
    %14 = vector.broadcast %13 : f32 to vector<8x1xf32>
    %15 = arith.mulf %0, %14 : vector<8x1xf32>
    %c1_11 = arith.constant 1 : index
    %c1_12 = arith.constant 1 : index
    %16 = memref.load %arg0[%c1_11, %c1_12] : memref<2x2xf32, #tpu.memory_space<smem>>
    %17 = vector.broadcast %16 : f32 to vector<8x1xf32>
    %18 = arith.mulf %1, %17 : vector<8x1xf32>
    %19 = arith.addf %15, %18 : vector<8x1xf32>
    %c1_13 = arith.constant 1 : index
    %20 = memref.load %arg1[%c1_13] : memref<2xf32, #tpu.memory_space<smem>>
    %21 = vector.broadcast %20 : f32 to vector<8x1xf32>
    %22 = arith.addf %19, %21 : vector<8x1xf32>
    %c0_14 = arith.constant 0 : index
    %c1_15 = arith.constant 1 : index
    %23 = vector.load %arg3[%c0_14, %c1_15] : memref<8x2xf32, #tpu.memory_space<vmem>>, vector<8x1xf32>
    tpu.vector_store %arg3[%c0_14, %c1_15], %22 {strides = array<i32>} : memref<8x2xf32, #tpu.memory_space<vmem>>, vector<8x1xf32>,
    return
  }
}

</mosaic_0001>

<bundles_post_ra>
// kernel: tpu_custom_call.1
= control target key start
LH: loop header
LB: loop body
LE: loop exit
PB: predicated region body
PF: predicated region fallthrough
CT: control target
= control target key end

     0   :  { %8 = vsyncpa [#allocation3], 0  ;;  %s157_s0 = inlined_call_operand.vmem [shape: f32[2,2], index: 0, kind: input, shape index: {}]   ;;  %s158_s1 = inlined_call_operand.vmem [shape: f32[2], index: 1, kind: input, shape index: {}]   ;;  %s159_s2 = inlined_call_operand.vmem [shape: f32[8,2], index: 2, kind: input, shape index: {}]   ;;  %s160_s3 = inlined_call_operand.vmem [shape: f32[8,2], index: 3, kind: output, shape index: {}]  }
   0x1   :  { %s15_s14 = sshll.u32 %s157_s0, 4  ;;  %s16_s14 = int_to_ptr.vmem [resolvable:$true] %s15_s14 }
   0x2   :  { %9 = vsyncpa [#allocation5], 0  ;;  %s24_s17 = sshll.u32 %s158_s1, 4  ;;  %s118_s18 = smov [#allocation2]   ;;  %s25_s17 = int_to_ptr.vmem [resolvable:$true] %s24_s17 }
   0x3   :  { %18 = dma.vmem_to_smem %s16_s14, 32, %s118_s18, [#allocation3]  }
   0x4   :  { %s119_s19 = smov [#allocation4]  }
   0x5   :  { %27 = dma.vmem_to_smem %s25_s17, 16, %s119_s19, [#allocation5]  }
   0x6   :  { %114 = dma.done.wait [#allocation3], 32  }
   0x7   :  { %115 = vsyncadd [#allocation3], 4294967264 }
   0x8   :  { %116 = dma.done.wait [#allocation5], 16  }
   0x9   :  { %117 = vsyncadd [#allocation5], 4294967280 }
   0xa   :  { %38 = sfence }
   0xb   :  { %s84_s20 = sld [smem:[#allocation2 + $0x81]]  ;;  %v39_v0 = vld [vmem:[%s159_s2] sm:$0xff]  ;;  %s120_s0 = smov 127   ;;  %vm54_vm0 = vcmask 7168   ;;  %vm74_vm1 = vcmask 15368  }
   0xc   :  { %s82_s1 = sld [smem:[#allocation2 + $0x1]]  ;;  %s121_s25 = smov 1  }
   0xd   :  { %s83_s23 = sld [smem:[#allocation2 + $0x80]] }
   0xe   :  { %s85_s24 = sld [smem:[#allocation4 + $0x1]] }
   0xf   :  { %s40_s26 = sld [smem:[#allocation2]] }
  0x10   :  { %s51_s2 = sld [smem:[#allocation4]] }
  0x11   :  { %v60_v1 = vstv %s84_s20 }
  0x12   :  { %v61_v2 = vmul.f32 %v60_v1, %v39_v0  ;;  %v44_v3 = vstv %s82_s1 }
  0x13   :  { %v45_v4 = vmul.f32 %v44_v3, %v39_v0  ;;  %v57_v5 = vstv %s83_s23 }
  0x14   :  { %63 = vrot.lane.b32.xlu0 %v61_v2, %s120_s0  ;;  %v58_v6 = vmul.f32 %v57_v5, %v39_v0  ;;  %v68_v8 = vstv %s85_s24 }
  0x15   :  { %v41_v11 = vstv %s40_s26 }
  0x16   :  { %v42_v12 = vmul.f32 %v41_v11, %v39_v0  ;;  %v52_v13 = vstv %s51_s2 }
  0x1c   :  { %47 = vrot.lane.b32.xlu0 %v45_v4, %s120_s0 }
  0x86   :  { %v64_v7 = vpop.permute.xlu0 %63 }
  0x87   :  { %v66_v9 = vadd.f32 %v64_v7, %v58_v6 }
  0x89   :  { %v69_v10 = vadd.f32 %v68_v8, %v66_v9 }
  0x8b   :  { %71 = vrot.lane.b32.xlu1 %v69_v10, %s121_s25 }
  0x8e   :  { %v48_v14 = vpop.permute.xlu0 %47 }
  0x8f   :  { %v50_v15 = vadd.f32 %v48_v14, %v42_v12 }
  0x91   :  { %v53_v16 = vadd.f32 %v52_v13, %v50_v15 }
  0x93   :  { %55 = vst.msk [vmem:[%s160_s3] sm:$0xff] %vm54_vm0, %v53_v16 }
  0xfd   :  { %v72_v17 = vpop.permute.xlu1 %71 }
  0xfe   :  { %75 = vst.msk [vmem:[%s160_s3] sm:$0xff] %vm74_vm1, %v72_v17 }
  0xff   :  { %80 = vsyncpa [#allocation3], 1 }
 0x100   :  { %81 = vsyncpa [#allocation5], 1 }

</bundles_post_ra>
